<compile_context>
chip_gen: v6e
topology: v6e:2x2x1
jax: 0.10.0
libtpu: 0.0.40
codegen_flags: <defaults>
</compile_context>

<pallas_src>
import functools

import jax
import jax.numpy as jnp
from jax.experimental import pallas as pl
from jax.experimental.pallas import tpu as pltpu

NEG_SLOPE = 0.2
BN_EPS = 1e-5
ROW_PACK = 4            # rows packed per super-row (4 * 32 out-channels = 128 lanes)
MAX_TILE_SROWS = 1024   # super-rows per grid step (per-tile VMEM stays well under 2 MiB)


def _leaky_relu(v):
    return jnp.where(v >= 0, v, NEG_SLOPE * v)


def _round_up(a, b):
    return (a + b - 1) // b * b


def _block_diag(blocks):
    rows = sum(b.shape[0] for b in blocks)
    cols = sum(b.shape[1] for b in blocks)
    out = jnp.zeros((rows, cols), blocks[0].dtype)
    r = c = 0
    for b in blocks:
        out = out.at[r:r + b.shape[0], c:c + b.shape[1]].set(b)
        r += b.shape[0]
        c += b.shape[1]
    return out


def _pack_params(params, n_layers):
    """Fuse the two heads (block-diag) and replicate x ROW_PACK for super-row packing."""

    def pack_w(w0, w1):
        return _block_diag([_block_diag([w0, w1])] * ROW_PACK).astype(jnp.bfloat16)

    def pack_b(b0, b1):
        return jnp.tile(jnp.concatenate([b0, b1], axis=-1), (1, ROW_PACK))

    w_in = pack_w(params["w_in0"], params["w_in1"])
    b_in = pack_b(params["b_in0"], params["b_in1"])
    wl = jnp.stack([pack_w(params["wl0"][l], params["wl1"][l]) for l in range(n_layers)])
    bl = jnp.stack([pack_b(params["bl0"][l], params["bl1"][l]) for l in range(n_layers)])
    w_out = _block_diag([params["w_out"]] * ROW_PACK).astype(jnp.bfloat16)
    b_out = jnp.tile(params["b_out"], (1, ROW_PACK))
    return w_in, b_in, wl, bl, w_out, b_out


def _encoder_kernel(x_ref, w_in_ref, b_in_ref, wl_ref, bl_ref, w_out_ref, b_out_ref,
                    y_ref, ssum_ref, ssq_ref,
                    *, n_layers, tile_srows, c_out, m_valid, m_padded):
    # x_ref: (T, ROW_PACK*2*C_in) bf16 -- 4 rows x (head0|head1) channels per super-row.
    # Weights are block-diagonal over (4 row-slots) x (2 heads); bf16 operands -> MXU,
    # f32 accumulation; all elementwise math stays f32 (VPU-friendly on v5e too).
    h = jnp.dot(x_ref[...], w_in_ref[...], preferred_element_type=jnp.float32)
    h = _leaky_relu(h + b_in_ref[...])
    # n_layers is a small compile-time constant; for large n_layers switch to
    # lax.fori_loop(..., unroll=True) to bound vreg live ranges.
    for layer in range(n_layers):
        w = wl_ref[layer]
        b = bl_ref[layer]
        h = h + _leaky_relu(
            jnp.dot(h.astype(jnp.bfloat16), w, preferred_element_type=jnp.float32) + b)

    y = jnp.dot(h.astype(jnp.bfloat16), w_out_ref[...],
                preferred_element_type=jnp.float32) + b_out_ref[...]

    if m_valid < m_padded:
        # Zero rows that exist only due to padding so the BatchNorm statistics are
        # computed over the true M rows (divide-by-M happens in the wrapper).
        srow = jax.lax.broadcasted_iota(jnp.int32, y.shape, 0)
        lane = jax.lax.broadcasted_iota(jnp.int32, y.shape, 1)
        grow = (pl.program_id(0) * tile_srows + srow) * ROW_PACK + lane // c_out
        y = jnp.where(grow < m_valid, y, 0.0)

    y_ref[...] = y                                            # lane-dense 128-wide store
    ssum_ref[...] = jnp.sum(y, axis=0, keepdims=True)[None]   # per-tile partial stats
    ssq_ref[...] = jnp.sum(y * y, axis=0, keepdims=True)[None]


def _bn_lrelu_kernel(y_ref, scale_ref, shift_ref, o_ref):
    v = y_ref[...] * scale_ref[...] + shift_ref[...]
    o_ref[...] = _leaky_relu(v)


def res_signal_encoder(signals, params, *, n_layers):
    """signals: tuple of 2 arrays with PyTorch layout [N, C_in, L] (float32)."""
    assert len(signals) == 2
    n, c_in, length = signals[0].shape
    m = n * length
    c_out = params["w_out"].shape[1]
    lanes = ROW_PACK * c_out                 # 128 when c_out == 32

    # NCL -> channels-last rows, heads concatenated on the channel axis.
    # TODO(synk): callers that can consume row-major NLC output directly should drop
    # the final transpose below (it is one extra XLA pass over the output tensor).
    x = jnp.concatenate(
        [jnp.transpose(s, (0, 2, 1)).reshape(m, c_in).astype(jnp.float32)
         for s in signals], axis=-1)

    # Row padding + 4-row super-row packing (row-major reshapes are free).
    srows = _round_up(m, ROW_PACK) // ROW_PACK
    tile_srows = min(MAX_TILE_SROWS, _round_up(srows, 8))
    srows_pad = _round_up(srows, tile_srows)
    m_pad = srows_pad * ROW_PACK
    x = jnp.pad(x, ((0, m_pad - m), (0, 0)))
    x = x.reshape(srows_pad, ROW_PACK * 2 * c_in).astype(jnp.bfloat16)

    w_in, b_in, wl, bl, w_out, b_out = _pack_params(params, n_layers)
    num_tiles = srows_pad // tile_srows

    kernel1 = functools.partial(
        _encoder_kernel, n_layers=n_layers, tile_srows=tile_srows,
        c_out=c_out, m_valid=m, m_padded=m_pad)

    y, ssum, ssq = pl.pallas_call(
        kernel1,
        grid=(num_tiles,),
        in_specs=[
            pl.BlockSpec((tile_srows, ROW_PACK * 2 * c_in), lambda i: (i, 0)),
            pl.BlockSpec(w_in.shape, lambda i: (0, 0)),     # weights stay VMEM-resident
            pl.BlockSpec(b_in.shape, lambda i: (0, 0)),
            pl.BlockSpec(wl.shape, lambda i: (0, 0, 0)),
            pl.BlockSpec(bl.shape, lambda i: (0, 0, 0)),
            pl.BlockSpec(w_out.shape, lambda i: (0, 0)),
            pl.BlockSpec(b_out.shape, lambda i: (0, 0)),
        ],
        out_specs=(
            pl.BlockSpec((tile_srows, lanes), lambda i: (i, 0)),
            pl.BlockSpec((1, 1, lanes), lambda i: (i, 0, 0)),
            pl.BlockSpec((1, 1, lanes), lambda i: (i, 0, 0)),
        ),
        out_shape=(
            jax.ShapeDtypeStruct((srows_pad, lanes), jnp.float32),
            jax.ShapeDtypeStruct((num_tiles, 1, lanes), jnp.float32),
            jax.ShapeDtypeStruct((num_tiles, 1, lanes), jnp.float32),
        ),
        compiler_params=pltpu.CompilerParams(dimension_semantics=("parallel",)),
    )(x, w_in, b_in, wl, bl, w_out, b_out)

    # Fold per-tile / per-row-slot partial sums into per-channel training-mode
    # BatchNorm stats (biased variance, divide by true M), then build scale / shift.
    s1 = jnp.sum(ssum, axis=(0, 1)).reshape(ROW_PACK, c_out).sum(axis=0)
    s2 = jnp.sum(ssq, axis=(0, 1)).reshape(ROW_PACK, c_out).sum(axis=0)
    mean = s1 / m
    var = jnp.maximum(s2 / m - mean * mean, 0.0)
    inv_std = jax.lax.rsqrt(var + BN_EPS)
    scale = jnp.tile(inv_std, ROW_PACK).reshape(1, lanes)
    shift = jnp.tile(-mean * inv_std, ROW_PACK).reshape(1, lanes)

    out = pl.pallas_call(
        _bn_lrelu_kernel,
        grid=(num_tiles,),
        in_specs=[
            pl.BlockSpec((tile_srows, lanes), lambda i: (i, 0)),
            pl.BlockSpec((1, lanes), lambda i: (0, 0)),
            pl.BlockSpec((1, lanes), lambda i: (0, 0)),
        ],
        out_specs=pl.BlockSpec((tile_srows, lanes), lambda i: (i, 0)),
        out_shape=jax.ShapeDtypeStruct((srows_pad, lanes), jnp.float32),
        input_output_aliases={0: 0},   # normalize y in place, no extra HBM buffer
        compiler_params=pltpu.CompilerParams(dimension_semantics=("parallel",)),
    )(y, scale, shift)

    # (srows_pad, 4*C_out) is bit-identical to row-major (m_pad, C_out): free reshape.
    out = out.reshape(m_pad, c_out)[:m].reshape(n, length, c_out)
    return jnp.transpose(out, (0, 2, 1))   # back to PyTorch NCL [N, C_out, L]


def init_params(key, in_channels, hidden_channels, out_channels, n_layers, num_heads=2):
    """Deterministic synthetic weights (uniform, 1/sqrt(fan_in) scale, like nn.Conv1d)."""
    assert num_heads == 2
    params = {}
    keys = jax.random.split(key, 4 * num_heads + 2)
    ki = iter(keys)

    def u(k, shape, fan_in):
        bound = 1.0 / jnp.sqrt(jnp.float32(fan_in))
        return jax.random.uniform(k, shape, jnp.float32, -bound, bound)

    for head in range(num_heads):
        params[f"w_in{head}"] = u(next(ki), (in_channels, hidden_channels), in_channels)
        params[f"b_in{head}"] = u(next(ki), (1, hidden_channels), in_channels)
        params[f"wl{head}"] = u(next(ki), (n_layers, hidden_channels, hidden_channels),
                                hidden_channels)
        params[f"bl{head}"] = u(next(ki), (n_layers, 1, hidden_channels), hidden_channels)

    fan_in_out = hidden_channels * num_heads
    params["w_out"] = u(next(ki), (fan_in_out, out_channels), fan_in_out)
    params["b_out"] = u(next(ki), (1, out_channels), fan_in_out)
    return params


if __name__ == "__main__":
    # Small shapes: batch=2, in_channels=4, length=16, hidden=32, heads=2, n_layers=3.
    # out_channels == hidden_channels (required by the module's BatchNorm1d(hidden_channels)).
    N, C_IN, L = 2, 4, 16
    HIDDEN, N_LAYERS, NUM_HEADS = 32, 3, 2
    C_OUT = HIDDEN

    key = jax.random.PRNGKey(0)
    k_sig0, k_sig1, k_params = jax.random.split(key, 3)

    signals = (
        jax.random.normal(k_sig0, (N, C_IN, L), jnp.float32),
        jax.random.normal(k_sig1, (N, C_IN, L), jnp.float32),
    )
    params = init_params(k_params, C_IN, HIDDEN, C_OUT, N_LAYERS, NUM_HEADS)

    out = res_signal_encoder(signals, params, n_layers=N_LAYERS)
    out = jax.block_until_ready(out)
    assert out.shape == (N, C_OUT, L), out.shape
    print("KERNEL_OK")
</pallas_src>

<mosaic_0001>
module attributes {stable_mosaic.version = 11 : i64} {
  func.func @_encoder_kernel(%arg0: i32, %arg1: memref<8x32xbf16, #tpu.memory_space<vmem>>, %arg2: memref<32x256xbf16, #tpu.memory_space<vmem>>, %arg3: memref<1x256xf32, #tpu.memory_space<vmem>>, %arg4: memref<3x256x256xbf16, #tpu.memory_space<vmem>>, %arg5: memref<3x1x256xf32, #tpu.memory_space<vmem>>, %arg6: memref<256x128xbf16, #tpu.memory_space<vmem>>, %arg7: memref<1x128xf32, #tpu.memory_space<vmem>>, %arg8: memref<8x128xf32, #tpu.memory_space<vmem>>, %arg9: memref<1x1x128xf32, #tpu.memory_space<vmem>>, %arg10: memref<1x1x128xf32, #tpu.memory_space<vmem>>) attributes {dimension_semantics = [#tpu.dimension_semantics<parallel>], iteration_bounds = array<i64: 1>, scalar_prefetch = 0 : i64, scratch_operands = 0 : i64, tpu.core_type = #tpu.core_type<tc>, window_params = [{transform_indices = @transform_0, window_bounds = array<i64: 8, 32>}, {pipeline_mode = #tpu.pipeline_mode<synchronous>, transform_indices = @transform_1, window_bounds = array<i64: 32, 256>}, {pipeline_mode = #tpu.pipeline_mode<synchronous>, transform_indices = @transform_2, window_bounds = array<i64: 1, 256>}, {pipeline_mode = #tpu.pipeline_mode<synchronous>, transform_indices = @transform_3, window_bounds = array<i64: 3, 256, 256>}, {pipeline_mode = #tpu.pipeline_mode<synchronous>, transform_indices = @transform_4, window_bounds = array<i64: 3, 1, 256>}, {pipeline_mode = #tpu.pipeline_mode<synchronous>, transform_indices = @transform_5, window_bounds = array<i64: 256, 128>}, {pipeline_mode = #tpu.pipeline_mode<synchronous>, transform_indices = @transform_6, window_bounds = array<i64: 1, 128>}, {transform_indices = @transform_7, window_bounds = array<i64: 8, 128>}, {transform_indices = @transform_8, window_bounds = array<i64: 1, 1, 128>}, {transform_indices = @transform_9, window_bounds = array<i64: 1, 1, 128>}]} {
    %c0 = arith.constant 0 : index
    %c0_0 = arith.constant 0 : index
    %0 = vector.load %arg1[%c0, %c0_0] : memref<8x32xbf16, #tpu.memory_space<vmem>>, vector<8x32xbf16>
    %c0_1 = arith.constant 0 : index
    %c0_2 = arith.constant 0 : index
    %1 = vector.load %arg2[%c0_1, %c0_2] : memref<32x256xbf16, #tpu.memory_space<vmem>>, vector<32x256xbf16>
    %cst = arith.constant dense<0.000000e+00> : vector<8x256xf32>
    %2 = tpu.matmul %0, %1, %cst {dimension_numbers = #tpu.dot_dimension_numbers<[1], [0], [0], [1], [0, 0, 1, 1], [], []>} : vector<8x32xbf16>, vector<32x256xbf16>, vector<8x256xf32> -> vector<8x256xf32>
    %c0_3 = arith.constant 0 : index
    %c0_4 = arith.constant 0 : index
    %3 = vector.load %arg3[%c0_3, %c0_4] : memref<1x256xf32, #tpu.memory_space<vmem>>, vector<1x256xf32>
    %4 = vector.broadcast %3 : vector<1x256xf32> to vector<8x256xf32>
    %5 = arith.addf %2, %4 : vector<8x256xf32>
    %cst_5 = arith.constant 0.000000e+00 : f32
    %6 = vector.broadcast %cst_5 : f32 to vector<8x256xf32>
    %7 = arith.cmpf oge, %5, %6 : vector<8x256xf32>
    %cst_6 = arith.constant 2.000000e-01 : f32
    %8 = vector.broadcast %cst_6 : f32 to vector<8x256xf32>
    %9 = arith.mulf %8, %5 : vector<8x256xf32>
    %10 = arith.select %7, %5, %9 : vector<8x256xi1>, vector<8x256xf32>
    %c0_7 = arith.constant 0 : index
    %c0_8 = arith.constant 0 : index
    %c0_9 = arith.constant 0 : index
    %11 = vector.load %arg4[%c0_7, %c0_8, %c0_9] : memref<3x256x256xbf16, #tpu.memory_space<vmem>>, vector<1x256x256xbf16>
    %12 = vector.shape_cast %11 : vector<1x256x256xbf16> to vector<256x256xbf16>
    %c0_10 = arith.constant 0 : index
    %c0_11 = arith.constant 0 : index
    %c0_12 = arith.constant 0 : index
    %13 = vector.load %arg5[%c0_10, %c0_11, %c0_12] : memref<3x1x256xf32, #tpu.memory_space<vmem>>, vector<1x1x256xf32>
    %14 = vector.shape_cast %13 : vector<1x1x256xf32> to vector<1x256xf32>
    %15 = arith.truncf %10 : vector<8x256xf32> to vector<8x256xbf16>
    %cst_13 = arith.constant dense<0.000000e+00> : vector<8x256xf32>
    %16 = tpu.matmul %15, %12, %cst_13 {dimension_numbers = #tpu.dot_dimension_numbers<[1], [0], [0], [1], [0, 0, 1, 1], [], []>} : vector<8x256xbf16>, vector<256x256xbf16>, vector<8x256xf32> -> vector<8x256xf32>
    %17 = vector.broadcast %14 : vector<1x256xf32> to vector<8x256xf32>
    %18 = arith.addf %16, %17 : vector<8x256xf32>
    %cst_14 = arith.constant 0.000000e+00 : f32
    %19 = vector.broadcast %cst_14 : f32 to vector<8x256xf32>
    %20 = arith.cmpf oge, %18, %19 : vector<8x256xf32>
    %cst_15 = arith.constant 2.000000e-01 : f32
    %21 = vector.broadcast %cst_15 : f32 to vector<8x256xf32>
    %22 = arith.mulf %21, %18 : vector<8x256xf32>
    %23 = arith.select %20, %18, %22 : vector<8x256xi1>, vector<8x256xf32>
    %24 = arith.addf %10, %23 : vector<8x256xf32>
    %c1 = arith.constant 1 : index
    %c0_16 = arith.constant 0 : index
    %c0_17 = arith.constant 0 : index
    %25 = vector.load %arg4[%c1, %c0_16, %c0_17] : memref<3x256x256xbf16, #tpu.memory_space<vmem>>, vector<1x256x256xbf16>
    %26 = vector.shape_cast %25 : vector<1x256x256xbf16> to vector<256x256xbf16>
    %c1_18 = arith.constant 1 : index
    %c0_19 = arith.constant 0 : index
    %c0_20 = arith.constant 0 : index
    %27 = vector.load %arg5[%c1_18, %c0_19, %c0_20] : memref<3x1x256xf32, #tpu.memory_space<vmem>>, vector<1x1x256xf32>
    %28 = vector.shape_cast %27 : vector<1x1x256xf32> to vector<1x256xf32>
    %29 = arith.truncf %24 : vector<8x256xf32> to vector<8x256xbf16>
    %cst_21 = arith.constant dense<0.000000e+00> : vector<8x256xf32>
    %30 = tpu.matmul %29, %26, %cst_21 {dimension_numbers = #tpu.dot_dimension_numbers<[1], [0], [0], [1], [0, 0, 1, 1], [], []>} : vector<8x256xbf16>, vector<256x256xbf16>, vector<8x256xf32> -> vector<8x256xf32>
    %31 = vector.broadcast %28 : vector<1x256xf32> to vector<8x256xf32>
    %32 = arith.addf %30, %31 : vector<8x256xf32>
    %cst_22 = arith.constant 0.000000e+00 : f32
    %33 = vector.broadcast %cst_22 : f32 to vector<8x256xf32>
    %34 = arith.cmpf oge, %32, %33 : vector<8x256xf32>
    %cst_23 = arith.constant 2.000000e-01 : f32
    %35 = vector.broadcast %cst_23 : f32 to vector<8x256xf32>
    %36 = arith.mulf %35, %32 : vector<8x256xf32>
    %37 = arith.select %34, %32, %36 : vector<8x256xi1>, vector<8x256xf32>
    %38 = arith.addf %24, %37 : vector<8x256xf32>
    %c2 = arith.constant 2 : index
    %c0_24 = arith.constant 0 : index
    %c0_25 = arith.constant 0 : index
    %39 = vector.load %arg4[%c2, %c0_24, %c0_25] : memref<3x256x256xbf16, #tpu.memory_space<vmem>>, vector<1x256x256xbf16>
    %40 = vector.shape_cast %39 : vector<1x256x256xbf16> to vector<256x256xbf16>
    %c2_26 = arith.constant 2 : index
    %c0_27 = arith.constant 0 : index
    %c0_28 = arith.constant 0 : index
    %41 = vector.load %arg5[%c2_26, %c0_27, %c0_28] : memref<3x1x256xf32, #tpu.memory_space<vmem>>, vector<1x1x256xf32>
    %42 = vector.shape_cast %41 : vector<1x1x256xf32> to vector<1x256xf32>
    %43 = arith.truncf %38 : vector<8x256xf32> to vector<8x256xbf16>
    %cst_29 = arith.constant dense<0.000000e+00> : vector<8x256xf32>
    %44 = tpu.matmul %43, %40, %cst_29 {dimension_numbers = #tpu.dot_dimension_numbers<[1], [0], [0], [1], [0, 0, 1, 1], [], []>} : vector<8x256xbf16>, vector<256x256xbf16>, vector<8x256xf32> -> vector<8x256xf32>
    %45 = vector.broadcast %42 : vector<1x256xf32> to vector<8x256xf32>
    %46 = arith.addf %44, %45 : vector<8x256xf32>
    %cst_30 = arith.constant 0.000000e+00 : f32
    %47 = vector.broadcast %cst_30 : f32 to vector<8x256xf32>
    %48 = arith.cmpf oge, %46, %47 : vector<8x256xf32>
    %cst_31 = arith.constant 2.000000e-01 : f32
    %49 = vector.broadcast %cst_31 : f32 to vector<8x256xf32>
    %50 = arith.mulf %49, %46 : vector<8x256xf32>
    %51 = arith.select %48, %46, %50 : vector<8x256xi1>, vector<8x256xf32>
    %52 = arith.addf %38, %51 : vector<8x256xf32>
    %53 = arith.truncf %52 : vector<8x256xf32> to vector<8x256xbf16>
    %c0_32 = arith.constant 0 : index
    %c0_33 = arith.constant 0 : index
    %54 = vector.load %arg6[%c0_32, %c0_33] : memref<256x128xbf16, #tpu.memory_space<vmem>>, vector<256x128xbf16>
    %cst_34 = arith.constant dense<0.000000e+00> : vector<8x128xf32>
    %55 = tpu.matmul %53, %54, %cst_34 {dimension_numbers = #tpu.dot_dimension_numbers<[1], [0], [0], [1], [0, 0, 1, 1], [], []>} : vector<8x256xbf16>, vector<256x128xbf16>, vector<8x128xf32> -> vector<8x128xf32>
    %c0_35 = arith.constant 0 : index
    %c0_36 = arith.constant 0 : index
    %56 = vector.load %arg7[%c0_35, %c0_36] : memref<1x128xf32, #tpu.memory_space<vmem>>, vector<1x128xf32>
    %57 = vector.broadcast %56 : vector<1x128xf32> to vector<8x128xf32>
    %58 = arith.addf %55, %57 : vector<8x128xf32>
    %c0_37 = arith.constant 0 : index
    %c0_38 = arith.constant 0 : index
    %59 = vector.load %arg8[%c0_37, %c0_38] : memref<8x128xf32, #tpu.memory_space<vmem>>, vector<8x128xf32>
    tpu.vector_store %arg8[%c0_37, %c0_38], %58 {strides = array<i32>} : memref<8x128xf32, #tpu.memory_space<vmem>>, vector<8x128xf32>,
    %cst_39 = arith.constant dense<0.000000e+00> : vector<128xf32>
    %60 = vector.multi_reduction <add>, %58, %cst_39 [0] : vector<8x128xf32> to vector<128xf32>
    %61 = vector.shape_cast %60 : vector<128xf32> to vector<1x128xf32>
    %62 = vector.shape_cast %61 : vector<1x128xf32> to vector<1x1x128xf32>
    %c0_40 = arith.constant 0 : index
    %c0_41 = arith.constant 0 : index
    %c0_42 = arith.constant 0 : index
    %63 = vector.load %arg9[%c0_40, %c0_41, %c0_42] : memref<1x1x128xf32, #tpu.memory_space<vmem>>, vector<1x1x128xf32>
    tpu.vector_store %arg9[%c0_40, %c0_41, %c0_42], %62 {strides = array<i32>} : memref<1x1x128xf32, #tpu.memory_space<vmem>>, vector<1x1x128xf32>,
    %64 = arith.mulf %58, %58 : vector<8x128xf32>
    %cst_43 = arith.constant dense<0.000000e+00> : vector<128xf32>
    %65 = vector.multi_reduction <add>, %64, %cst_43 [0] : vector<8x128xf32> to vector<128xf32>
    %66 = vector.shape_cast %65 : vector<128xf32> to vector<1x128xf32>
    %67 = vector.shape_cast %66 : vector<1x128xf32> to vector<1x1x128xf32>
    %c0_44 = arith.constant 0 : index
    %c0_45 = arith.constant 0 : index
    %c0_46 = arith.constant 0 : index
    %68 = vector.load %arg10[%c0_44, %c0_45, %c0_46] : memref<1x1x128xf32, #tpu.memory_space<vmem>>, vector<1x1x128xf32>
    tpu.vector_store %arg10[%c0_44, %c0_45, %c0_46], %67 {strides = array<i32>} : memref<1x1x128xf32, #tpu.memory_space<vmem>>, vector<1x1x128xf32>,
    return
  }
  func.func @transform_0(%arg0: i32) -> (i32, i32) {
    %c0_i32 = arith.constant 0 : i32
    %c0_i32_0 = arith.constant 0 : i32
    return %arg0, %c0_i32 : i32, i32
  }
  func.func @transform_1(%arg0: i32) -> (i32, i32) {
    %c0_i32 = arith.constant 0 : i32
    %c0_i32_0 = arith.constant 0 : i32
    %c0_i32_1 = arith.constant 0 : i32
    return %c0_i32, %c0_i32_0 : i32, i32
  }
  func.func @transform_2(%arg0: i32) -> (i32, i32) {
    %c0_i32 = arith.constant 0 : i32
    %c0_i32_0 = arith.constant 0 : i32
    %c0_i32_1 = arith.constant 0 : i32
    return %c0_i32, %c0_i32_0 : i32, i32
  }
  func.func @transform_3(%arg0: i32) -> (i32, i32, i32) {
    %c0_i32 = arith.constant 0 : i32
    %c0_i32_0 = arith.constant 0 : i32
    %c0_i32_1 = arith.constant 0 : i32
    %c0_i32_2 = arith.constant 0 : i32
    return %c0_i32, %c0_i32_0, %c0_i32_1 : i32, i32, i32
  }
  func.func @transform_4(%arg0: i32) -> (i32, i32, i32) {
    %c0_i32 = arith.constant 0 : i32
    %c0_i32_0 = arith.constant 0 : i32
    %c0_i32_1 = arith.constant 0 : i32
    %c0_i32_2 = arith.constant 0 : i32
    return %c0_i32, %c0_i32_0, %c0_i32_1 : i32, i32, i32
  }
  func.func @transform_5(%arg0: i32) -> (i32, i32) {
    %c0_i32 = arith.constant 0 : i32
    %c0_i32_0 = arith.constant 0 : i32
    %c0_i32_1 = arith.constant 0 : i32
    return %c0_i32, %c0_i32_0 : i32, i32
  }
  func.func @transform_6(%arg0: i32) -> (i32, i32) {
    %c0_i32 = arith.constant 0 : i32
    %c0_i32_0 = arith.constant 0 : i32
    %c0_i32_1 = arith.constant 0 : i32
    return %c0_i32, %c0_i32_0 : i32, i32
  }
  func.func @transform_7(%arg0: i32) -> (i32, i32) {
    %c0_i32 = arith.constant 0 : i32
    %c0_i32_0 = arith.constant 0 : i32
    return %arg0, %c0_i32 : i32, i32
  }
  func.func @transform_8(%arg0: i32) -> (i32, i32, i32) {
    %c0_i32 = arith.constant 0 : i32
    %c0_i32_0 = arith.constant 0 : i32
    %c0_i32_1 = arith.constant 0 : i32
    return %arg0, %c0_i32, %c0_i32_0 : i32, i32, i32
  }
  func.func @transform_9(%arg0: i32) -> (i32, i32, i32) {
    %c0_i32 = arith.constant 0 : i32
    %c0_i32_0 = arith.constant 0 : i32
    %c0_i32_1 = arith.constant 0 : i32
    return %arg0, %c0_i32, %c0_i32_0 : i32, i32, i32
  }
}

</mosaic_0001>

<bundles_post_ra>
// kernel: tpu_custom_call.1
= control target key start
LH: loop header
LB: loop body
LE: loop exit
PB: predicated region body
PF: predicated region fallthrough
CT: control target
= control target key end

     0   :  { %15 = vsyncpa [#allocation3], 0  ;;  %s1802_s0 = inlined_call_operand.hbm [shape: bf16[8,32], index: 0, kind: input, shape index: {}]   ;;  %s1803_s1 = inlined_call_operand.hbm [shape: bf16[32,256], index: 1, kind: input, shape index: {}]   ;;  %s1804_s2 = inlined_call_operand.hbm [shape: f32[1,256], index: 2, kind: input, shape index: {}]   ;;  %s1805_s3 = inlined_call_operand.hbm [shape: bf16[3,256,256], index: 3, kind: input, shape index: {}]   ;;  %s1806_s4 = inlined_call_operand.vmem [shape: f32[3,1,256], index: 4, kind: input, shape index: {}]   ;;  %s1807_s5 = inlined_call_operand.hbm [shape: bf16[256,128], index: 5, kind: input, shape index: {}]   ;;  %s1808_s6 = inlined_call_operand.vmem [shape: f32[1,128], index: 6, kind: input, shape index: {}]   ;;  %s1809_s7 = inlined_call_operand.hbm [shape: f32[8,128], index: 7, kind: output, shape index: {0}]   ;;  %s1810_s8 = inlined_call_operand.hbm [shape: f32[1,1,128], index: 8, kind: output, shape index: {1}]   ;;  %s1811_s9 = inlined_call_operand.hbm [shape: f32[1,1,128], index: 9, kind: output, shape index: {2}]  }
   0x1   :  { %16 = vsyncpa [#allocation6], 0 }
   0x2   :  { %17 = vsyncpa [#allocation9], 0 }
   0x3   :  { %18 = vsyncpa [#allocation4], 0 }
   0x4   :  { %19 = vsyncpa [#allocation13], 0  ;;  %s1681_s30 = smov [#allocation5]  }
   0x5   :  { %s35_s10 = sshll.u32 %s1681_s30, 4  ;;  %s36_s10 = int_to_ptr.vmem [resolvable:$true] %s35_s10 }
   0x6   :  { %s1519_s11 = scalar_lea.vmem %s36_s10, 512  ;;  %p1524_p1 = scmp.lt.s32.totalorder %s36_s10, %s36_s10 }
   0x7   :  { %p1520_p0 = scmp.ne.s32.totalorder %s36_s10, %s1519_s11  ;;  %p1525_p2 = scmp.lt.s32.totalorder %s1519_s11, %s1519_s11 }
   0x9   :  { %p1526_p3 = por %p1525_p2, %p1524_p1 }
   0xb   :  { %p1527_p4 = pnand %p1526_p3, %p1520_p0 }
   0xd   :  { %1530 = shalt.err (!%p1527_p4)
}
   0xe   :  { %s1682_s12 = smov 128   ;;  %s1683_s13 = smov 8  }
   0xf   :  { %41 = dma.hbm_to_vmem [thread:$0]  %s1803_s1, 512, %s36_s10, [#allocation6], %s1682_s12, %s1682_s12, %s1683_s13  }
  0x10   :  { %s1684_s16 = smov [#allocation8]   ;;  %s1685_s18 = smov [#allocation2]  }
  0x11   :  { %s57_s17 = sshll.u32 %s1684_s16, 4  ;;  %s26_s19 = sshll.u32 %s1685_s18, 4  ;;  %s58_s17 = int_to_ptr.vmem [resolvable:$true] %s57_s17  ;;  %s27_s19 = int_to_ptr.vmem [resolvable:$true] %s26_s19 }
  0x12   :  { %s1539_s20 = scalar_lea.vmem %s58_s17, 12288  ;;  %p1544_p6 = scmp.lt.s32.totalorder %s58_s17, %s58_s17 }
  0x13   :  { %p1540_p5 = scmp.ne.s32.totalorder %s58_s17, %s1539_s20  ;;  %p1545_p7 = scmp.lt.s32.totalorder %s1539_s20, %s1539_s20 }
  0x15   :  { %p1546_p8 = por %p1545_p7, %p1544_p6 }
  0x17   :  { %p1547_p9 = pnand %p1546_p8, %p1540_p5 }
  0x19   :  { %1550 = shalt.err (!%p1547_p9)
}
  0x1a   :  { %63 = dma.hbm_to_vmem [thread:$0]  %s1805_s3, 12288, %s58_s17, [#allocation9], %s1682_s12, %s1682_s12, %s1683_s13  }
  0x1b   :  { %s1559_s23 = scalar_lea.vmem %s27_s19, 64  ;;  %p1564_p11 = scmp.lt.s32.totalorder %s27_s19, %s27_s19 }
  0x1c   :  { %p1560_p10 = scmp.ne.s32.totalorder %s27_s19, %s1559_s23  ;;  %p1565_p12 = scmp.lt.s32.totalorder %s1559_s23, %s1559_s23 }
  0x1e   :  { %p1566_p13 = por %p1565_p12, %p1564_p11 }
  0x20   :  { %p1567_p0 = pnand %p1566_p13, %p1560_p10 }
  0x22   :  { %1570 = shalt.err (!%p1567_p0)
}
  0x23   :  { %29 = dma.hbm_to_vmem [thread:$0]  %s1802_s0, 64, %s27_s19, [#allocation3]  }
  0x24   :  { %s1686_s25 = smov [#allocation7]   ;;  %s1687_s27 = smov [#allocation10]  }
  0x25   :  { %s48_s26 = sshll.u32 %s1686_s25, 4  ;;  %s71_s28 = sshll.u32 %s1687_s27, 4  ;;  %s49_s26 = int_to_ptr.vmem [resolvable:$true] %s48_s26  ;;  %s72_s28 = int_to_ptr.vmem [resolvable:$true] %s71_s28 }
  0x26   :  { %s1579_s29 = scalar_lea.vmem %s49_s26, 32  ;;  %p1584_p2 = scmp.lt.s32.totalorder %s49_s26, %s49_s26 }
  0x27   :  { %p1580_p1 = scmp.ne.s32.totalorder %s49_s26, %s1579_s29  ;;  %p1585_p3 = scmp.lt.s32.totalorder %s1579_s29, %s1579_s29 }
  0x29   :  { %p1586_p4 = por %p1585_p3, %p1584_p2 }
  0x2b   :  { %p1587_p5 = pnand %p1586_p4, %p1580_p1 }
  0x2d   :  { %1590 = shalt.err (!%p1587_p5)
}
  0x2e   :  { %51 = dma.hbm_to_vmem [thread:$0]  %s1804_s2, 32, %s49_s26, [#allocation6]  }
  0x2f   :  { %s1599_s10 = scalar_lea.vmem %s72_s28, 2048  ;;  %p1604_p7 = scmp.lt.s32.totalorder %s72_s28, %s72_s28 }
  0x30   :  { %p1600_p6 = scmp.ne.s32.totalorder %s72_s28, %s1599_s10  ;;  %p1605_p8 = scmp.lt.s32.totalorder %s1599_s10, %s1599_s10 }
  0x32   :  { %p1606_p9 = por %p1605_p8, %p1604_p7 }
  0x34   :  { %p1607_p10 = pnand %p1606_p9, %p1600_p6 }
  0x36   :  { %1610 = shalt.err (!%p1607_p10)
}
  0x37   :  { %s1688_s0 = smov 64   ;;  %s1689_s11 = smov 4  }
  0x38   :  { %77 = dma.hbm_to_vmem [thread:$0]  %s1807_s5, 2048, %s72_s28, [#allocation9], %s1688_s0, %s1688_s0, %s1689_s11  }
  0x39   :  { %1671 = dma.done.wait [#allocation3], 64  }
  0x3a   :  { %1672 = vsyncadd [#allocation3], 4294967232 }
  0x3b   :  { %1673 = dma.done.wait [#allocation6], 544  }
  0x3c   :  { %1674 = vsyncadd [#allocation6], 4294966752 }
  0x3d   :  { %1675 = dma.done.wait [#allocation9], 14336  }
  0x3e   :  { %1676 = vsyncadd [#allocation9], 4294952960  ;;  %v1690_v0 = vmov 0   ;;  %v1345_v1 = vld [vmem:[#allocation5 + $0x14] ss:$8 sps:$4 sm:$0xff]   ;;  %vm133_vm0 = vcmask 261120  }
  0x3f   :  { %169 = vmatprep.mubr.bf16.mxu0 %v1690_v0  ;;  %v1347_v2 = vld [vmem:[#allocation5 + $0x10] ss:$8 sps:$4 sm:$0xff]   ;;  %149 = vmatprep.subr.bf16.mxu0 %v1345_v1  ;;  %v1348_v3 = vld [vmem:[#allocation5 + $0x4] ss:$8 sps:$4 sm:$0xff]   ;;  %v1350_v4 = vld [vmem:[#allocation5] ss:$8 sps:$4 sm:$0xff]   ;;  %v103_v0 = vlaneseq }
  0x40   :  { %150 = vmatpush1.bf16.msra.mxu0 %v1347_v2  ;;  %v1351_v5 = vld [vmem:[#allocation8 + $0x74] ss:$8 sps:$4 sm:$0xff]   ;;  %v1353_v6 = vld [vmem:[#allocation8 + $0x70] ss:$8 sps:$4 sm:$0xff]   ;;  %v1354_v7 = vld [vmem:[#allocation8 + $0x64] ss:$8 sps:$4 sm:$0xff]  }
  0x41   :  { %151 = vmatprep.subr.bf16.mxu0 %v1348_v3  ;;  %390 = vmatprep.subr.bf16.mxu1 %v1351_v5  ;;  %v96_v8 = vld [vmem:[#allocation2] sm:$0xf]  ;;  %v1356_v9 = vld [vmem:[#allocation8 + $0x60] ss:$8 sps:$4 sm:$0xff]   ;;  %v1360_v12 = vld [vmem:[#allocation8 + $0x44] ss:$8 sps:$4 sm:$0xff]  }
  0x42   :  { %391 = vmatpush1.bf16.msra.mxu1 %v1353_v6  ;;  %v1357_v10 = vld [vmem:[#allocation8 + $0x54] ss:$8 sps:$4 sm:$0xff]   ;;  %v1359_v11 = vld [vmem:[#allocation8 + $0x50] ss:$8 sps:$4 sm:$0xff]   ;;  %v1362_v13 = vld [vmem:[#allocation8 + $0x40] ss:$8 sps:$4 sm:$0xff]  }
  0x43   :  { %392 = vmatprep.subr.bf16.mxu1 %v1354_v7  ;;  %v1363_v14 = vld [vmem:[#allocation8 + $0x34] ss:$8 sps:$4 sm:$0xff]   ;;  %v1365_v15 = vld [vmem:[#allocation8 + $0x30] ss:$8 sps:$4 sm:$0xff]   ;;  %v1366_v16 = vld [vmem:[#allocation8 + $0x24] ss:$8 sps:$4 sm:$0xff]  }
  0x44   :  { %152 = vmatpush1.bf16.msra.mxu0 %v1350_v4  ;;  %v1368_v17 = vld [vmem:[#allocation8 + $0x20] ss:$8 sps:$4 sm:$0xff]   ;;  %v1369_v18 = vld [vmem:[#allocation8 + $0x14] ss:$8 sps:$4 sm:$0xff]   ;;  %v1371_v19 = vld [vmem:[#allocation8 + $0x10] ss:$8 sps:$4 sm:$0xff]  }
  0x45   :  { %v1372_v20 = vld [vmem:[#allocation8 + $0x4] ss:$8 sps:$4 sm:$0xff]   ;;  %v1374_v21 = vld [vmem:[#allocation8] ss:$8 sps:$4 sm:$0xff]   ;;  %v1375_v22 = vld [vmem:[#allocation8 + $0xf4] ss:$8 sps:$4 sm:$0xff]  }
  0x46   :  { %393 = vmatpush1.bf16.msra.mxu1 %v1356_v9  ;;  %v1377_v23 = vld [vmem:[#allocation8 + $0xf0] ss:$8 sps:$4 sm:$0xff]   ;;  %v1378_v24 = vld [vmem:[#allocation8 + $0xe4] ss:$8 sps:$4 sm:$0xff]   ;;  %v1380_v25 = vld [vmem:[#allocation8 + $0xe0] ss:$8 sps:$4 sm:$0xff]  }
  0x47   :  { %1194 = vmatmul.mubr.msk.bf16.vlgmr.msra.gmra.mxu0 %vm133_vm0, %v96_v8  ;;  %394 = vmatprep.subr.bf16.mxu1 %v1357_v10  ;;  %v1381_v26 = vld [vmem:[#allocation8 + $0xd4] ss:$8 sps:$4 sm:$0xff]   ;;  %v1383_v27 = vld [vmem:[#allocation8 + $0xd0] ss:$8 sps:$4 sm:$0xff]   ;;  %v1384_v28 = vld [vmem:[#allocation8 + $0xc4] ss:$8 sps:$4 sm:$0xff]  }
  0x48   :  { %v1386_v29 = vld [vmem:[#allocation8 + $0xc0] ss:$8 sps:$4 sm:$0xff]   ;;  %v1387_v30 = vld [vmem:[#allocation8 + $0xb4] ss:$8 sps:$4 sm:$0xff]   ;;  %v1389_v31 = vld [vmem:[#allocation8 + $0xb0] ss:$8 sps:$4 sm:$0xff]  }
  0x49   :  { %v1390_v32 = vld [vmem:[#allocation8 + $0xa4] ss:$8 sps:$4 sm:$0xff]   ;;  %v1392_v33 = vld [vmem:[#allocation8 + $0xa0] ss:$8 sps:$4 sm:$0xff]   ;;  %v1393_v34 = vld [vmem:[#allocation8 + $0x94] ss:$8 sps:$4 sm:$0xff]  }
  0x4a   :  { %395 = vmatpush1.bf16.msra.mxu1 %v1359_v11  ;;  %v1395_v35 = vld [vmem:[#allocation8 + $0x90] ss:$8 sps:$4 sm:$0xff]   ;;  %v1396_v36 = vld [vmem:[#allocation8 + $0x84] ss:$8 sps:$4 sm:$0xff]   ;;  %v1398_v37 = vld [vmem:[#allocation8 + $0x80] ss:$8 sps:$4 sm:$0xff]  }
  0x4b   :  { %396 = vmatprep.subr.bf16.mxu1 %v1360_v12  ;;  %v1399_v38 = vld [vmem:[#allocation8 + $0x170] ss:$8 sps:$4 sm:$0xff]   ;;  %v1401_v39 = vld [vmem:[#allocation8 + $0x174] ss:$8 sps:$4 sm:$0xff]   ;;  %v1404_v40 = vld [vmem:[#allocation8 + $0x164] ss:$8 sps:$4 sm:$0xff]  }
  0x4c   :  { %647 = vmatprep.subr.bf16.mxu0 %v1401_v39  ;;  %v1402_v41 = vld [vmem:[#allocation8 + $0x160] ss:$8 sps:$4 sm:$0xff]   ;;  %v1407_v42 = vld [vmem:[#allocation8 + $0x154] ss:$8 sps:$4 sm:$0xff]   ;;  %v1405_v43 = vld [vmem:[#allocation8 + $0x150] ss:$8 sps:$4 sm:$0xff]  }
  0x4d   :  { %648 = vmatpush1.bf16.msra.mxu0 %v1399_v38  ;;  %v1410_v44 = vld [vmem:[#allocation8 + $0x144] ss:$8 sps:$4 sm:$0xff]   ;;  %v1408_v45 = vld [vmem:[#allocation8 + $0x140] ss:$8 sps:$4 sm:$0xff]   ;;  %v1413_v46 = vld [vmem:[#allocation8 + $0x134] ss:$8 sps:$4 sm:$0xff]  }
  0x4e   :  { %397 = vmatpush1.bf16.msra.mxu1 %v1362_v13  ;;  %649 = vmatprep.subr.bf16.mxu0 %v1404_v40  ;;  %v1411_v47 = vld [vmem:[#allocation8 + $0x130] ss:$8 sps:$4 sm:$0xff]   ;;  %v1416_v48 = vld [vmem:[#allocation8 + $0x124] ss:$8 sps:$4 sm:$0xff]   ;;  %v1414_v49 = vld [vmem:[#allocation8 + $0x120] ss:$8 sps:$4 sm:$0xff]  }
  0x4f   :  { %398 = vmatprep.subr.bf16.mxu1 %v1363_v14  ;;  %v1419_v50 = vld [vmem:[#allocation8 + $0x114] ss:$8 sps:$4 sm:$0xff]   ;;  %v1417_v51 = vld [vmem:[#allocation8 + $0x110] ss:$8 sps:$4 sm:$0xff]   ;;  %v1422_v52 = vld [vmem:[#allocation8 + $0x104] ss:$8 sps:$4 sm:$0xff]  }
  0x50   :  { %v1420_v53 = vld [vmem:[#allocation8 + $0x100] ss:$8 sps:$4 sm:$0xff]   ;;  %v1425_v54 = vld [vmem:[#allocation8 + $0x1f4] ss:$8 sps:$4 sm:$0xff]   ;;  %v1423_v55 = vld [vmem:[#allocation8 + $0x1f0] ss:$8 sps:$4 sm:$0xff]  }
  0x51   :  { %650 = vmatpush1.bf16.msra.mxu0 %v1402_v41  ;;  %v1428_v56 = vld [vmem:[#allocation8 + $0x1e4] ss:$8 sps:$4 sm:$0xff]   ;;  %v1426_v57 = vld [vmem:[#allocation8 + $0x1e0] ss:$8 sps:$4 sm:$0xff]   ;;  %v1431_v58 = vld [vmem:[#allocation8 + $0x1d4] ss:$8 sps:$4 sm:$0xff]  }
  0x52   :  { %399 = vmatpush1.bf16.msra.mxu1 %v1365_v15  ;;  %651 = vmatprep.subr.bf16.mxu0 %v1407_v42  ;;  %v1429_v59 = vld [vmem:[#allocation8 + $0x1d0] ss:$8 sps:$4 sm:$0xff]   ;;  %v1434_v60 = vld [vmem:[#allocation8 + $0x1c4] ss:$8 sps:$4 sm:$0xff]   ;;  %v1432_v61 = vld [vmem:[#allocation8 + $0x1c0] ss:$8 sps:$4 sm:$0xff]  }
  0x53   :  { %400 = vmatprep.subr.bf16.mxu1 %v1366_v16  ;;  %v1437_v62 = vld [vmem:[#allocation8 + $0x1b4] ss:$8 sps:$4 sm:$0xff]   ;;  %v1435_v63 = vld [vmem:[#allocation8 + $0x1b0] ss:$8 sps:$4 sm:$0xff]   ;;  %v104_v1 = vshrl.u32 %v103_v0, 7  ;;  %s1691_s19 = smov [#allocation11]  }
  0x54   :  { %v101_v3 = vld [vmem:[#allocation7] sm:$0x3]  ;;  %v1465_v38 = vld [vmem:[#allocation8 + $0x210] ss:$8 sps:$4 sm:$0xff]   ;;  %v1470_v39 = vld [vmem:[#allocation8 + $0x204] ss:$8 sps:$4 sm:$0xff]  }
  0x55   :  { %652 = vmatpush1.bf16.msra.mxu0 %v1405_v43  ;;  %v1759_v2 = vsub.s32 0, %v104_v1  ;;  %v1761_v4 = vsub.s32 1, %v104_v1  ;;  %v1468_v40 = vld [vmem:[#allocation8 + $0x200] ss:$8 sps:$4 sm:$0xff]   ;;  %v1473_v41 = vld [vmem:[#allocation8 + $0x2f4] ss:$8 sps:$4 sm:$0xff]  }
  0x56   :  { %401 = vmatpush1.bf16.msra.mxu1 %v1368_v17  ;;  %653 = vmatprep.subr.bf16.mxu0 %v1410_v44  ;;  %v1471_v42 = vld [vmem:[#allocation8 + $0x2f0] ss:$8 sps:$4 sm:$0xff]   ;;  %v1476_v43 = vld [vmem:[#allocation8 + $0x2e4] ss:$8 sps:$4 sm:$0xff]   ;;  %v1474_v44 = vld [vmem:[#allocation8 + $0x2e0] ss:$8 sps:$4 sm:$0xff]  }
  0x57   :  { %402 = vmatprep.subr.bf16.mxu1 %v1369_v18  ;;  %v106_v5 = vrot.slane %v101_v3, %v1759_v2  ;;  %v110_v6 = vrot.slane %v101_v3, %v1761_v4  ;;  %s1152_s20 = sshll.u32 %s1691_s19, 4  ;;  %s1153_s20 = int_to_ptr.vmem [resolvable:$true] %s1152_s20 }
  0x58   :  { %s1611_s21 = scalar_lea.vmem %s1153_s20, 128  ;;  %p1616_p12 = scmp.lt.s32.totalorder %s1153_s20, %s1153_s20 }
  0x59   :  { %654 = vmatpush1.bf16.msra.mxu0 %v1408_v45  ;;  %v1479_v45 = vld [vmem:[#allocation8 + $0x2d4] ss:$8 sps:$4 sm:$0xff]   ;;  %p1612_p11 = scmp.ne.s32.totalorder %s1153_s20, %s1611_s21  ;;  %p1617_p13 = scmp.lt.s32.totalorder %s1611_s21, %s1611_s21 }
  0x5a   :  { %403 = vmatpush1.bf16.msra.mxu1 %v1371_v19  ;;  %655 = vmatprep.subr.bf16.mxu0 %v1413_v46  ;;  %v1440_v19 = vld [vmem:[#allocation8 + $0x1a4] ss:$8 sps:$4 sm:$0xff]   ;;  %v1477_v46 = vld [vmem:[#allocation8 + $0x2d0] ss:$8 sps:$4 sm:$0xff]  }
  0x5b   :  { %404 = vmatprep.subr.bf16.mxu1 %v1372_v20  ;;  %v1438_v20 = vld [vmem:[#allocation8 + $0x1a0] ss:$8 sps:$4 sm:$0xff]   ;;  %p1618_p0 = por %p1617_p13, %p1616_p12 }
  0x5d   :  { %656 = vmatpush1.bf16.msra.mxu0 %v1411_v47  ;;  %v1482_v47 = vld [vmem:[#allocation8 + $0x2c4] ss:$8 sps:$4 sm:$0xff]   ;;  %p1619_p1 = pnand %p1618_p0, %p1612_p11 }
  0x5e   :  { %405 = vmatpush1.bf16.msra.mxu1 %v1374_v21  ;;  %657 = vmatprep.subr.bf16.mxu0 %v1416_v48  ;;  %v1443_v21 = vld [vmem:[#allocation8 + $0x194] ss:$8 sps:$4 sm:$0xff]   ;;  %v1480_v48 = vld [vmem:[#allocation8 + $0x2c0] ss:$8 sps:$4 sm:$0xff]  }
  0x5f   :  { %406 = vmatprep.subr.bf16.mxu1 %v1375_v22  ;;  %v1441_v22 = vld [vmem:[#allocation8 + $0x190] ss:$8 sps:$4 sm:$0xff]  }
  0x61   :  { %658 = vmatpush1.bf16.msra.mxu0 %v1414_v49  ;;  %v1485_v49 = vld [vmem:[#allocation8 + $0x2b4] ss:$8 sps:$4 sm:$0xff]  }
  0x62   :  { %407 = vmatpush2.bf16.msra.mxu1 %v1377_v23  ;;  %659 = vmatprep.subr.bf16.mxu0 %v1419_v50  ;;  %v1444_v23 = vld [vmem:[#allocation8 + $0x180] ss:$8 sps:$4 sm:$0xff]   ;;  %v1483_v50 = vld [vmem:[#allocation8 + $0x2b0] ss:$8 sps:$4 sm:$0xff]  }
  0x63   :  { %408 = vmatprep.subr.bf16.mxu1 %v1378_v24  ;;  %v1446_v24 = vld [vmem:[#allocation8 + $0x184] ss:$8 sps:$4 sm:$0xff]  }
  0x65   :  { %660 = vmatpush1.bf16.msra.mxu0 %v1417_v51  ;;  %v216_v51 = vld [vmem:[%s1806_s4] sm:$0x3] }
  0x66   :  { %409 = vmatpush2.bf16.msra.mxu1 %v1380_v25  ;;  %661 = vmatprep.subr.bf16.mxu0 %v1422_v52  ;;  %v1447_v25 = vld [vmem:[#allocation8 + $0x270] ss:$8 sps:$4 sm:$0xff]   ;;  %v223_v52 = vrot.slane %v216_v51, %v1759_v2 }
  0x67   :  { %410 = vmatprep.subr.bf16.mxu1 %v1381_v26  ;;  %v1449_v26 = vld [vmem:[#allocation8 + $0x274] ss:$8 sps:$4 sm:$0xff]  }
  0x69   :  { %662 = vmatpush1.bf16.msra.mxu0 %v1420_v53  ;;  %v227_v53 = vrot.slane %v216_v51, %v1761_v4 }
  0x6a   :  { %411 = vmatpush2.bf16.msra.mxu1 %v1383_v27  ;;  %663 = vmatprep.subr.bf16.mxu0 %v1425_v54  ;;  %v1452_v27 = vld [vmem:[#allocation8 + $0x264] ss:$8 sps:$4 sm:$0xff]  }
  0x6b   :  { %412 = vmatprep.subr.bf16.mxu1 %v1384_v28  ;;  %v1450_v28 = vld [vmem:[#allocation8 + $0x260] ss:$8 sps:$4 sm:$0xff]  }
  0x6d   :  { %664 = vmatpush2.bf16.msra.mxu0 %v1423_v55 }
  0x6e   :  { %413 = vmatpush2.bf16.msra.mxu1 %v1386_v29  ;;  %665 = vmatprep.subr.bf16.mxu0 %v1428_v56  ;;  %v1455_v29 = vld [vmem:[#allocation8 + $0x254] ss:$8 sps:$4 sm:$0xff]  }
  0x6f   :  { %414 = vmatprep.subr.bf16.mxu1 %v1387_v30  ;;  %v1453_v30 = vld [vmem:[#allocation8 + $0x250] ss:$8 sps:$4 sm:$0xff]  }
  0x71   :  { %666 = vmatpush2.bf16.msra.mxu0 %v1426_v57 }
  0x72   :  { %415 = vmatpush2.bf16.msra.mxu1 %v1389_v31  ;;  %667 = vmatprep.subr.bf16.mxu0 %v1431_v58  ;;  %v1458_v31 = vld [vmem:[#allocation8 + $0x244] ss:$8 sps:$4 sm:$0xff]  }
  0x73   :  { %416 = vmatprep.subr.bf16.mxu1 %v1390_v32  ;;  %v1456_v32 = vld [vmem:[#allocation8 + $0x240] ss:$8 sps:$4 sm:$0xff]  }
  0x75   :  { %668 = vmatpush2.bf16.msra.mxu0 %v1429_v59 }
  0x76   :  { %417 = vmatpush2.bf16.msra.mxu1 %v1392_v33  ;;  %669 = vmatprep.subr.bf16.mxu0 %v1434_v60  ;;  %v1461_v33 = vld [vmem:[#allocation8 + $0x234] ss:$8 sps:$4 sm:$0xff]  }
  0x77   :  { %418 = vmatprep.subr.bf16.mxu1 %v1393_v34  ;;  %v1459_v34 = vld [vmem:[#allocation8 + $0x230] ss:$8 sps:$4 sm:$0xff]  }
  0x79   :  { %670 = vmatpush2.bf16.msra.mxu0 %v1432_v61 }
  0x7a   :  { %419 = vmatpush2.bf16.msra.mxu1 %v1395_v35  ;;  %671 = vmatprep.subr.bf16.mxu0 %v1437_v62  ;;  %v1464_v35 = vld [vmem:[#allocation8 + $0x224] ss:$8 sps:$4 sm:$0xff]  }
  0x7b   :  { %420 = vmatprep.subr.bf16.mxu1 %v1396_v36  ;;  %v1462_v36 = vld [vmem:[#allocation8 + $0x220] ss:$8 sps:$4 sm:$0xff]  }
  0x7d   :  { %672 = vmatpush2.bf16.msra.mxu0 %v1435_v63 }
  0x7e   :  { %421 = vmatpush2.bf16.msra.mxu1 %v1398_v37  ;;  %673 = vmatprep.subr.bf16.mxu0 %v1440_v19  ;;  %v1467_v37 = vld [vmem:[#allocation8 + $0x214] ss:$8 sps:$4 sm:$0xff]   ;;  %v1502_v19 = vld [vmem:[#allocation10 + $0x20] sm:$0xff]  }
  0x7f   :  { %904 = vmatprep.subr.bf16.mxu1 %v1449_v26 }
  0x81   :  { %674 = vmatpush2.bf16.msra.mxu0 %v1438_v20  ;;  %v1503_v20 = vld [vmem:[#allocation10 + $0x58] sm:$0xff]  }
  0x82   :  { %675 = vmatprep.subr.bf16.mxu0 %v1443_v21  ;;  %v1504_v21 = vld [vmem:[#allocation10 + $0x18] sm:$0xff]  }
  0x85   :  { %676 = vmatpush2.bf16.msra.mxu0 %v1441_v22  ;;  %v1227_v22 = vld [vmem:[%s1806_s4 + $0x2] sm:$0x3] }
  0x86   :  { %677 = vmatprep.subr.bf16.mxu0 %v1446_v24  ;;  %v484_v24 = vrot.slane %v1227_v22, %v1761_v4 }
  0x89   :  { %678 = vmatpush2.bf16.msra.mxu0 %v1444_v23  ;;  %v480_v23 = vrot.slane %v1227_v22, %v1759_v2 }
 0x107   :  { %v171_v7 = vpop.f32.mrf.mxu0 }
 0x108   :  { %v172_v8 = vadd.f32 %v171_v7, %v106_v5  ;;  %v1486_v7 = vld [vmem:[#allocation8 + $0x2a0] ss:$8 sps:$4 sm:$0xff]  }
 0x109   :  { %v173_v9 = vpop.f32.mrf.mxu0 }
 0x10a   :  { %vm178_vm1 = vcmp.ge.f32.partialorder %v172_v8, 0.0  ;;  %v180_v10 = vmul.f32 0.2, %v172_v8  ;;  %v174_v11 = vadd.f32 %v173_v9, %v110_v6  ;;  %v1488_v6 = vld [vmem:[#allocation8 + $0x2a4] ss:$8 sps:$4 sm:$0xff]  }
 0x10b   :  { %v175_v12 = vpop.f32.mrf.mxu0  ;;  %v1489_v9 = vld [vmem:[#allocation8 + $0x290] ss:$8 sps:$4 sm:$0xff]  }
 0x10c   :  { %v181_v13 = vmul.f32 0.2, %v174_v11  ;;  %vm179_vm2 = vcmp.ge.f32.partialorder %v174_v11, 0.0  ;;  %v1765_v15 = vsel %vm178_vm1, %v172_v8, %v180_v10  ;;  %v1491_v8 = vld [vmem:[#allocation8 + $0x294] ss:$8 sps:$4 sm:$0xff]  }
 0x10d   :  { %v176_v14 = vpop.f32.mrf.mxu0  ;;  %v217_v18 = vpack.c.bf16 %v1765_v15, %v1765_v15  ;;  %v1492_v10 = vld [vmem:[#allocation8 + $0x280] ss:$8 sps:$4 sm:$0xff]   ;;  %v1495_v12 = vld [vmem:[#allocation10 + $0x78] sm:$0xff]  }
 0x10e   :  { %v1767_v16 = vsel %vm179_vm2, %v174_v11, %v181_v13  ;;  %v1494_v11 = vld [vmem:[#allocation8 + $0x284] ss:$8 sps:$4 sm:$0xff]   ;;  %v1496_v13 = vld [vmem:[#allocation10 + $0x38] sm:$0xff]   ;;  %v1497_v14 = vld [vmem:[#allocation10 + $0x70] sm:$0xff]   ;;  %1310 = vmatprep.subr.bf16.mxu0 %v1495_v12 }
 0x10f   :  { %v218_v17 = vpack.c.bf16 %v1767_v16, %v1767_v16 }
 0x111   :  { %422 = vmatprep.mubr.bf16.mxu1 %v218_v17  ;;  %v1500_v17 = vld [vmem:[#allocation10 + $0x28] sm:$0xff]  }
 0x112   :  { %423 = vmatmul.mubr.bf16.vlgmr.msra.gmra.mxu1 %v217_v18  ;;  %v1501_v18 = vld [vmem:[#allocation10 + $0x60] sm:$0xff]  }
 0x113   :  { %905 = vmatpush1.bf16.msra.mxu1 %v1447_v25 }
 0x114   :  { %906 = vmatprep.subr.bf16.mxu1 %v1452_v27 }
 0x117   :  { %907 = vmatpush1.bf16.msra.mxu1 %v1450_v28 }
 0x118   :  { %908 = vmatprep.subr.bf16.mxu1 %v1455_v29 }
 0x11b   :  { %909 = vmatpush1.bf16.msra.mxu1 %v1453_v30 }
 0x11c   :  { %910 = vmatprep.subr.bf16.mxu1 %v1458_v31 }
 0x11f   :  { %911 = vmatpush1.bf16.msra.mxu1 %v1456_v32 }
 0x120   :  { %912 = vmatprep.subr.bf16.mxu1 %v1461_v33 }
 0x123   :  { %913 = vmatpush1.bf16.msra.mxu1 %v1459_v34 }
 0x124   :  { %914 = vmatprep.subr.bf16.mxu1 %v1464_v35 }
 0x127   :  { %915 = vmatpush1.bf16.msra.mxu1 %v1462_v36 }
 0x128   :  { %916 = vmatprep.subr.bf16.mxu1 %v1467_v37 }
 0x12b   :  { %917 = vmatpush1.bf16.msra.mxu1 %v1465_v38 }
 0x12c   :  { %918 = vmatprep.subr.bf16.mxu1 %v1470_v39  ;;  %v1505_v39 = vld [vmem:[#allocation10 + $0x50] sm:$0xff]  }
 0x12f   :  { %919 = vmatpush1.bf16.msra.mxu1 %v1468_v40  ;;  %v1506_v40 = vld [vmem:[#allocation10 + $0x10] sm:$0xff]  }
 0x130   :  { %920 = vmatprep.subr.bf16.mxu1 %v1473_v41  ;;  %v1507_v41 = vld [vmem:[#allocation10 + $0x48] sm:$0xff]  }
 0x133   :  { %921 = vmatpush2.bf16.msra.mxu1 %v1471_v42  ;;  %v1508_v42 = vld [vmem:[#allocation10 + $0x8] sm:$0xff]  }
 0x134   :  { %922 = vmatprep.subr.bf16.mxu1 %v1476_v43  ;;  %v1509_v43 = vld [vmem:[#allocation10 + $0x40] sm:$0xff]  }
 0x137   :  { %923 = vmatpush2.bf16.msra.mxu1 %v1474_v44  ;;  %v1510_v44 = vld [vmem:[#allocation10] sm:$0xff]  }
 0x138   :  { %924 = vmatprep.subr.bf16.mxu1 %v1479_v45  ;;  %v1260_v45 = vld [vmem:[%s1806_s4 + $0x4] sm:$0x3] }
 0x13b   :  { %925 = vmatpush2.bf16.msra.mxu1 %v1477_v46  ;;  %v737_v46 = vrot.slane %v1260_v45, %v1759_v2 }
 0x13c   :  { %926 = vmatprep.subr.bf16.mxu1 %v1482_v47  ;;  %v741_v47 = vrot.slane %v1260_v45, %v1761_v4  ;;  %v1293_v4 = vld [vmem:[%s1808_s6] ss:$0 sm:$0xff] }
 0x13f   :  { %927 = vmatpush2.bf16.msra.mxu1 %v1480_v48 }
 0x140   :  { %928 = vmatprep.subr.bf16.mxu1 %v1485_v49 }
 0x143   :  { %929 = vmatpush2.bf16.msra.mxu1 %v1483_v50 }
 0x144   :  { %930 = vmatprep.subr.bf16.mxu1 %v1488_v6 }
 0x147   :  { %931 = vmatpush2.bf16.msra.mxu1 %v1486_v7 }
 0x148   :  { %932 = vmatprep.subr.bf16.mxu1 %v1491_v8 }
 0x14b   :  { %933 = vmatpush2.bf16.msra.mxu1 %v1489_v9 }
 0x14c   :  { %934 = vmatprep.subr.bf16.mxu1 %v1494_v11 }
 0x14f   :  { %935 = vmatpush2.bf16.msra.mxu1 %v1492_v10 }
 0x1d2   :  { %v424_v54 = vpop.f32.mrf.mxu1 }
 0x1d3   :  { %v425_v55 = vadd.f32 %v424_v54, %v223_v52 }
 0x1d4   :  { %v426_v56 = vpop.f32.mrf.mxu1 }
 0x1d5   :  { %vm431_vm3 = vcmp.ge.f32.partialorder %v425_v55, 0.0  ;;  %v433_v57 = vmul.f32 0.2, %v425_v55  ;;  %v427_v58 = vadd.f32 %v426_v56, %v227_v53 }
 0x1d6   :  { %v428_v59 = vpop.f32.mrf.mxu1 }
 0x1d7   :  { %v435_v60 = vsel %vm431_vm3, %v425_v55, %v433_v57  ;;  %vm432_vm4 = vcmp.ge.f32.partialorder %v427_v58, 0.0  ;;  %v434_v61 = vmul.f32 0.2, %v427_v58 }
 0x1d8   :  { %v429_v62 = vpop.f32.mrf.mxu1  ;;  %v437_v63 = vadd.f32 %v435_v60, %v1765_v15  ;;  %v1498_v15 = vld [vmem:[#allocation10 + $0x30] sm:$0xff]  }
 0x1d9   :  { %v436_v0 = vsel %vm432_vm4, %v427_v58, %v434_v61 }
 0x1da   :  { %v438_v1 = vadd.f32 %v436_v0, %v1767_v16  ;;  %v474_v5 = vpack.c.bf16 %v437_v63, %v437_v63  ;;  %v1499_v16 = vld [vmem:[#allocation10 + $0x68] sm:$0xff]  }
 0x1dc   :  { %v475_v3 = vpack.c.bf16 %v438_v1, %v438_v1 }
 0x1de   :  { %679 = vmatprep.mubr.bf16.mxu0 %v475_v3 }
 0x1df   :  { %680 = vmatmul.mubr.bf16.vlgmr.msra.gmra.mxu0 %v474_v5 }
 0x1e0   :  { %1311 = vmatpush3.bf16.msra.mxu0 %v1496_v13 }
 0x1e1   :  { %1312 = vmatprep.subr.bf16.mxu0 %v1497_v14 }
 0x1e4   :  { %1313 = vmatpush3.bf16.msra.mxu0 %v1498_v15 }
 0x1e5   :  { %1314 = vmatprep.subr.bf16.mxu0 %v1499_v16 }
 0x1e8   :  { %1315 = vmatpush3.bf16.msra.mxu0 %v1500_v17 }
 0x1e9   :  { %1316 = vmatprep.subr.bf16.mxu0 %v1501_v18 }
 0x1ec   :  { %1317 = vmatpush3.bf16.msra.mxu0 %v1502_v19 }
 0x1ed   :  { %1318 = vmatprep.subr.bf16.mxu0 %v1503_v20 }
 0x1f0   :  { %1319 = vmatpush3.bf16.msra.mxu0 %v1504_v21 }
 0x1f1   :  { %1320 = vmatprep.subr.bf16.mxu0 %v1505_v39 }
 0x1f4   :  { %1321 = vmatpush3.bf16.msra.mxu0 %v1506_v40 }
 0x1f5   :  { %1322 = vmatprep.subr.bf16.mxu0 %v1507_v41 }
 0x1f8   :  { %1323 = vmatpush3.bf16.msra.mxu0 %v1508_v42 }
 0x1f9   :  { %1324 = vmatprep.subr.bf16.mxu0 %v1509_v43 }
 0x1fc   :  { %1325 = vmatpush3.bf16.msra.mxu0 %v1510_v44 }
 0x29f   :  { %v681_v25 = vpop.f32.mrf.mxu0 }
 0x2a0   :  { %v682_v26 = vadd.f32 %v681_v25, %v480_v23 }
 0x2a1   :  { %v683_v27 = vpop.f32.mrf.mxu0 }
 0x2a2   :  { %vm688_vm5 = vcmp.ge.f32.partialorder %v682_v26, 0.0  ;;  %v690_v28 = vmul.f32 0.2, %v682_v26  ;;  %v684_v29 = vadd.f32 %v683_v27, %v484_v24 }
 0x2a3   :  { %v685_v30 = vpop.f32.mrf.mxu0 }
 0x2a4   :  { %v692_v31 = vsel %vm688_vm5, %v682_v26, %v690_v28  ;;  %vm689_vm6 = vcmp.ge.f32.partialorder %v684_v29, 0.0  ;;  %v691_v32 = vmul.f32 0.2, %v684_v29 }
 0x2a5   :  { %v686_v33 = vpop.f32.mrf.mxu0  ;;  %v694_v34 = vadd.f32 %v692_v31, %v437_v63 }
 0x2a6   :  { %v693_v35 = vsel %vm689_vm6, %v684_v29, %v691_v32 }
 0x2a7   :  { %v695_v36 = vadd.f32 %v693_v35, %v438_v1  ;;  %v731_v38 = vpack.c.bf16 %v694_v34, %v694_v34 }
 0x2a9   :  { %v732_v37 = vpack.c.bf16 %v695_v36, %v695_v36 }
 0x2ab   :  { %936 = vmatprep.mubr.bf16.mxu1 %v732_v37 }
 0x2ac   :  { %937 = vmatmul.mubr.bf16.vlgmr.msra.gmra.mxu1 %v731_v38 }
 0x36c   :  { %v938_v48 = vpop.f32.mrf.mxu1 }
 0x36d   :  { %v939_v49 = vadd.f32 %v938_v48, %v737_v46 }
 0x36e   :  { %v940_v50 = vpop.f32.mrf.mxu1 }
 0x36f   :  { %vm945_vm7 = vcmp.ge.f32.partialorder %v939_v49, 0.0  ;;  %v947_v51 = vmul.f32 0.2, %v939_v49  ;;  %v941_v52 = vadd.f32 %v940_v50, %v741_v47 }
 0x370   :  { %v942_v53 = vpop.f32.mrf.mxu1 }
 0x371   :  { %v949_v54 = vsel %vm945_vm7, %v939_v49, %v947_v51  ;;  %vm946_vm8 = vcmp.ge.f32.partialorder %v941_v52, 0.0  ;;  %v948_v55 = vmul.f32 0.2, %v941_v52 }
 0x372   :  { %v943_v56 = vpop.f32.mrf.mxu1  ;;  %v951_v57 = vadd.f32 %v949_v54, %v694_v34 }
 0x373   :  { %v950_v58 = vsel %vm946_vm8, %v941_v52, %v948_v55 }
 0x374   :  { %v952_v59 = vadd.f32 %v950_v58, %v695_v36  ;;  %v953_v61 = vpack.c.bf16 %v951_v57, %v951_v57 }
 0x376   :  { %v954_v60 = vpack.c.bf16 %v952_v59, %v952_v59 }
 0x378   :  { %1122 = vmatprep.mubr.bf16.mxu0 %v954_v60 }
 0x379   :  { %1123 = vmatmul.mubr.bf16.vlgmr.msra.gmra.mxu0 %v953_v61 }
 0x439   :  { %v1326_v2 = vpop.f32.mrf.mxu0 }
 0x43b   :  { %v1327_v62 = vpop.f32.mrf.mxu0 }
 0x43c   :  { %v1328_v63 = vadd.f32 %v1327_v62, %v1326_v2 }
 0x43d   :  { %v1329_v0 = vpop.f32.mrf.mxu0 }
 0x43e   :  { %v1125_v1 = vadd.f32 %v1328_v63, %v1293_v4 }
 0x43f   :  { %v1330_v3 = vpop.f32.mrf.mxu0 }
 0x440   :  { %v1138_v5 = vmul.f32 %v1125_v1, %v1125_v1  ;;  %1130 = vst [vmem:[#allocation11] sm:$0xff] %v1125_v1  ;;  %v1131_v6 = vrot.slane %v1125_v1, 4 }
 0x441   :  { %1622 = shalt.err (!%p1619_p1)
}
 0x442   :  { %1155 = dma.vmem_to_hbm [thread:$0]  %s1153_s20, 128, %s1809_s7, [#allocation4]   ;;  %v1132_v7 = vadd.f32 %v1131_v6, %v1125_v1  ;;  %v1139_v8 = vrot.slane %v1138_v5, 4 }
 0x443   :  { %s1692_s23 = smov [#allocation12]   ;;  %s1693_s24 = smov [#allocation14]  }
 0x444   :  { %v1133_v9 = vrot.slane %v1132_v7, 2  ;;  %v1140_v10 = vadd.f32 %v1139_v8, %v1138_v5  ;;  %s1162_s1 = sshll.u32 %s1692_s23, 4  ;;  %s1172_s25 = sshll.u32 %s1693_s24, 4  ;;  %s1163_s1 = int_to_ptr.vmem [resolvable:$true] %s1162_s1  ;;  %s1173_s25 = int_to_ptr.vmem [resolvable:$true] %s1172_s25 }
 0x445   :  { %s1631_s26 = scalar_lea.vmem %s1163_s1, 16  ;;  %s1635_s7 = scalar_lea.vmem %s1163_s1, 32 }
 0x446   :  { %v1134_v11 = vadd.f32 %v1133_v9, %v1132_v7  ;;  %v1141_v12 = vrot.slane %v1140_v10, 2  ;;  %p1632_p2 = scmp.ne.s32.totalorder %s1163_s1, %s1631_s26  ;;  %p1636_p3 = scmp.lt.s32.totalorder %s1163_s1, %s1163_s1 }
 0x447   :  { %p1637_p4 = scmp.lt.s32.totalorder %s1635_s7, %s1631_s26 }
 0x448   :  { %v1135_v13 = vrot.slane %v1134_v11, 1  ;;  %v1142_v14 = vadd.f32 %v1141_v12, %v1140_v10 }
 0x449   :  { %p1638_p5 = por %p1637_p4, %p1636_p3 }
 0x44a   :  { %v1136_v15 = vadd.f32 %v1135_v13, %v1134_v11  ;;  %v1143_v16 = vrot.slane %v1142_v14, 1 }
 0x44b   :  { %p1639_p6 = pnand %p1638_p5, %p1632_p2 }
 0x44c   :  { %1137 = vst [vmem:[#allocation12] sm:$0x1] %v1136_v15  ;;  %v1144_v17 = vadd.f32 %v1143_v16, %v1142_v14 }
 0x44d   :  { %1642 = shalt.err (!%p1639_p6)
}
 0x44e   :  { %1165 = dma.vmem_to_hbm [thread:$0]  %s1163_s1, 16, %s1810_s8, [#allocation13]   ;;  %1145 = vst [vmem:[#allocation14] sm:$0x1] %v1144_v17 }
 0x44f   :  { %s1651_s29 = scalar_lea.vmem %s1173_s25, 16  ;;  %s1655_s3 = scalar_lea.vmem %s1173_s25, 32 }
 0x450   :  { %p1652_p7 = scmp.ne.s32.totalorder %s1173_s25, %s1651_s29  ;;  %p1656_p8 = scmp.lt.s32.totalorder %s1173_s25, %s1173_s25 }
 0x451   :  { %p1657_p9 = scmp.lt.s32.totalorder %s1655_s3, %s1651_s29 }
 0x453   :  { %p1658_p10 = por %p1657_p9, %p1656_p8 }
 0x455   :  { %p1659_p11 = pnand %p1658_p10, %p1652_p7 }
 0x457   :  { %1662 = shalt.err (!%p1659_p11)
}
 0x458   :  { %1175 = dma.vmem_to_hbm [thread:$0]  %s1173_s25, 16, %s1811_s9, [#allocation13]  }
 0x459   :  { %1677 = dma.done.wait [#allocation4], 128  }
 0x45a   :  { %1678 = vsyncadd [#allocation4], 4294967168 }
 0x45b   :  { %1679 = dma.done.wait [#allocation13], 32  }
 0x45c   :  { %1680 = vsyncadd [#allocation13], 4294967264 }
 0x45d   :  { %1185 = vsyncpa [#allocation3], 1 }
 0x45e   :  { %1186 = vsyncpa [#allocation6], 1 }
 0x45f   :  { %1187 = vsyncpa [#allocation9], 1 }
 0x460   :  { %1188 = vsyncpa [#allocation4], 1 }
 0x461   :  { %1189 = vsyncpa [#allocation13], 1 }

</bundles_post_ra>
